<compile_context>
chip_gen: v7x
topology: tpu7x:2x2x1
jax: 0.10.0
libtpu: 0.0.40
codegen_flags: <defaults>
</compile_context>

<pallas_src>
import math

import jax
import jax.numpy as jnp
from jax.experimental import pallas as pl
from jax.experimental.pallas import tpu as pltpu


def make_self_attention_kernel(num_heads, head_dim, tq):
    scale = 1.0 / math.sqrt(head_dim)

    def kernel(x_ref, mask_ref, wq_ref, bq_ref, wkv_ref, bkv_ref,
               o_ref, k_scr, v_scr):
        i = pl.program_id(1)           # q-tile index ("arbitrary" axis)
        nh, d = num_heads, head_dim
        s = x_ref.shape[1]             # full sequence length
        h = x_ref.shape[2]             # hidden size

        # --- K/V projection: once per batch element, cached across q-tiles. ---
        @pl.when(i == 0)
        def _():
            x2d = x_ref[0]                                              # (S, H) bf16
            kv = jnp.dot(x2d, wkv_ref[...],
                         preferred_element_type=jnp.float32) + bkv_ref[...]
            kv = kv.astype(jnp.bfloat16)                                # (S, 2H)
            k2d = kv[:, :h]
            v2d = kv[:, h:]
            # (S, H) -> (nh, S, d): one structured relayout per batch element.
            k_scr[...] = jnp.moveaxis(k2d.reshape(s, nh, d), 1, 0)
            v_scr[...] = jnp.moveaxis(v2d.reshape(s, nh, d), 1, 0)

        # --- Q projection for this q-tile: full-width (TQ, H) @ (H, H). ---
        row0 = pl.multiple_of(i * tq, tq)
        xq = x_ref[0, pl.ds(row0, tq), :]                               # (TQ, H) bf16
        q2d = jnp.dot(xq, wq_ref[...],
                      preferred_element_type=jnp.float32) + bq_ref[...]
        # Fold 1/sqrt(d) into Q (cheaper than scaling the (TQ, S) scores).
        q2d = q2d * scale
        qh = jnp.moveaxis(q2d.reshape(tq, nh, d), 1, 0).astype(jnp.bfloat16)

        # --- Scores + BERT additive mask + numerically stable f32 softmax. ---
        scores = jnp.einsum("hqd,hkd->hqk", qh, k_scr[...],
                            preferred_element_type=jnp.float32)         # (nh,TQ,S)
        add_mask = (1.0 - mask_ref[0]) * (-10000.0)                     # (1, S)
        scores = scores + add_mask

        m = jnp.max(scores, axis=-1, keepdims=True)
        e = jnp.exp(scores - m)
        denom = jnp.sum(e, axis=-1, keepdims=True)
        p = (e * pl.reciprocal(denom, approx=True)).astype(jnp.bfloat16)

        # TODO(synk): dropout on attention_probs omitted (eval-mode identity).

        # --- Context + single lane-dense (TQ, H) store. ---
        ctx = jnp.einsum("hqk,hkd->hqd", p, v_scr[...],
                         preferred_element_type=jnp.float32)            # (nh,TQ,d)
        out2d = jnp.moveaxis(ctx, 0, 1).reshape(tq, h)
        o_ref[0] = out2d.astype(o_ref.dtype)

    return kernel


def _pick_tq(seq_len):
    """Query-tile size: divisor search instead of only S % 256 == 0."""
    if seq_len <= 512:
        return seq_len
    for cand in (512, 384, 256, 128):
        if seq_len % cand == 0:
            return cand
    for cand in range(512, 7, -8):           # any multiple-of-8 divisor
        if seq_len % cand == 0:
            return cand
    return seq_len


def self_attention(hidden_states, attention_mask, params, num_heads):
    """hidden_states: (B, S, H) f32; attention_mask: (B, S) f32 (1 = keep)."""
    B, S, H = hidden_states.shape
    assert H % num_heads == 0
    d = H // num_heads

    # bf16 activations (they feed the MXU anyway -> halves HBM/VMEM traffic).
    x = hidden_states.astype(jnp.bfloat16)
    # Mask as (B, 1, S) so the block layout is unambiguous.
    mask = attention_mask.reshape(B, 1, S).astype(jnp.float32)

    # Full-width (lane-dense) weights; K|V fused into one (H, 2H) matmul.
    wq = params["wq"].astype(jnp.bfloat16)                                    # (H, H)
    wkv = jnp.concatenate([params["wk"], params["wv"]], -1).astype(jnp.bfloat16)  # (H, 2H)
    bq = params["bq"].astype(jnp.float32)                                     # (1, H)
    bkv = jnp.concatenate([params["bk"], params["bv"]], -1).astype(jnp.float32)   # (1, 2H)

    TQ = _pick_tq(S)
    nq = S // TQ

    kernel = make_self_attention_kernel(num_heads, d, TQ)

    # Q proj 2*S*H^2 + K/V proj (once per batch elem) 4*S*H^2 + attention 4*S^2*H.
    cost = pl.CostEstimate(
        flops=int(B * (6 * S * H * H + 4 * S * S * H)),
        transcendentals=int(B * num_heads * S * S),
        bytes_accessed=int(2 * B * S * H          # bf16 activations in
                           + 4 * B * S * H        # f32 output
                           + 4 * B * S            # mask
                           + 2 * 3 * H * H        # bf16 weights
                           + 4 * 3 * H),          # f32 biases
    )

    grid_spec = pltpu.PrefetchScalarGridSpec(
        num_scalar_prefetch=0,
        grid=(B, nq),
        in_specs=[
            # Single full-sequence activation block: q rows are sliced from it
            # and K/V are projected from it (one activation DMA stream).
            pl.BlockSpec((1, S, H), lambda b, i: (b, 0, 0)),
            pl.BlockSpec((1, 1, S), lambda b, i: (b, 0, 0)),
            # Weight/bias index maps are constant -> fetched once.
            # (At large H, pipeline_mode=pl.Buffered(1) would also drop the
            #  unused second pipeline buffer; unnecessary at these sizes.)
            pl.BlockSpec((H, H), lambda b, i: (0, 0)),
            pl.BlockSpec((1, H), lambda b, i: (0, 0)),
            pl.BlockSpec((H, 2 * H), lambda b, i: (0, 0)),
            pl.BlockSpec((1, 2 * H), lambda b, i: (0, 0)),
        ],
        out_specs=pl.BlockSpec((1, TQ, H), lambda b, i: (b, i, 0)),
        scratch_shapes=[
            pltpu.VMEM((num_heads, S, d), jnp.bfloat16),   # K cache
            pltpu.VMEM((num_heads, S, d), jnp.bfloat16),   # V cache
        ],
    )

    return pl.pallas_call(
        kernel,
        out_shape=jax.ShapeDtypeStruct((B, S, H), hidden_states.dtype),
        grid_spec=grid_spec,
        compiler_params=pltpu.CompilerParams(
            # Batch axis parallel (megacore on v7x); q-tile axis arbitrary so
            # the K/V scratch cache persists across tiles of a batch element.
            dimension_semantics=("parallel", "arbitrary"),
            vmem_limit_bytes=48 * 1024 * 1024,
        ),
        cost_estimate=cost,
    )(x, mask, wq, bq, wkv, bkv)


def reference_self_attention(x, mask, params, num_heads):
    """Plain-JAX f32 reference mirroring the PyTorch forward (dropout in eval)."""
    B, S, H = x.shape
    d = H // num_heads
    q = x @ params["wq"] + params["bq"][0]
    k = x @ params["wk"] + params["bk"][0]
    v = x @ params["wv"] + params["bv"][0]

    def split(t):  # (B,S,H) -> (B,nh,S,d)
        return t.reshape(B, S, num_heads, d).transpose(0, 2, 1, 3)

    qh, kh, vh = split(q), split(k), split(v)
    scores = jnp.einsum("bhqd,bhkd->bhqk", qh, kh) / math.sqrt(d)
    add_mask = (1.0 - mask)[:, None, None, :] * (-10000.0)
    scores = scores + add_mask
    probs = jax.nn.softmax(scores, axis=-1)
    ctx = jnp.einsum("bhqk,bhkd->bhqd", probs, vh)
    return ctx.transpose(0, 2, 1, 3).reshape(B, S, H)


if __name__ == "__main__":
    B, S, H = 2, 8, 32
    num_heads = 4

    key = jax.random.PRNGKey(0)
    k_x, kq, kbq, kk, kbk, kv, kbv = jax.random.split(key, 7)

    hidden_states = jax.random.normal(k_x, (B, S, H), dtype=jnp.float32)
    # Mask: last 2 positions of each sequence masked out (0.0), rest kept (1.0).
    attention_mask = jnp.concatenate(
        [jnp.ones((B, S - 2), jnp.float32), jnp.zeros((B, 2), jnp.float32)],
        axis=-1)

    bound = 1.0 / math.sqrt(H)
    params = {
        # Stored pre-transposed: y = x @ W^T + b with W^T of shape (H_in, H_out).
        "wq": jax.random.uniform(kq, (H, H), jnp.float32, -bound, bound),
        "bq": jax.random.uniform(kbq, (1, H), jnp.float32, -bound, bound),
        "wk": jax.random.uniform(kk, (H, H), jnp.float32, -bound, bound),
        "bk": jax.random.uniform(kbk, (1, H), jnp.float32, -bound, bound),
        "wv": jax.random.uniform(kv, (H, H), jnp.float32, -bound, bound),
        "bv": jax.random.uniform(kbv, (1, H), jnp.float32, -bound, bound),
    }

    out = self_attention(hidden_states, attention_mask, params, num_heads)
    out = jax.block_until_ready(out)

    ref = reference_self_attention(hidden_states, attention_mask, params, num_heads)
    assert out.shape == (B, S, H)
    # bf16 MXU inputs + approx reciprocal -> compare with loose tolerance.
    assert jnp.allclose(out, ref, atol=3e-2, rtol=3e-2), (
        "max abs err %f" % float(jnp.max(jnp.abs(out - ref))))

    print("KERNEL_OK")
</pallas_src>

<mosaic_0001>
module attributes {stable_mosaic.version = 11 : i64} {
  func.func @kernel(%arg0: i32, %arg1: i32, %arg2: memref<1x8x32xbf16, #tpu.memory_space<vmem>>, %arg3: memref<1x1x8xf32, #tpu.memory_space<vmem>>, %arg4: memref<32x32xbf16, #tpu.memory_space<vmem>>, %arg5: memref<1x32xf32, #tpu.memory_space<vmem>>, %arg6: memref<32x64xbf16, #tpu.memory_space<vmem>>, %arg7: memref<1x64xf32, #tpu.memory_space<vmem>>, %arg8: memref<1x8x32xf32, #tpu.memory_space<vmem>>, %arg9: memref<4x8x8xbf16, #tpu.memory_space<vmem>>, %arg10: memref<4x8x8xbf16, #tpu.memory_space<vmem>>) attributes {dimension_semantics = [#tpu.dimension_semantics<parallel>, #tpu.dimension_semantics<arbitrary>], iteration_bounds = array<i64: 2, 1>, scalar_prefetch = 0 : i64, scratch_operands = 2 : i64, tpu.core_type = #tpu.core_type<tc>, window_params = [{transform_indices = @transform_0, window_bounds = array<i64: 1, 8, 32>}, {transform_indices = @transform_1, window_bounds = array<i64: 1, 1, 8>}, {pipeline_mode = #tpu.pipeline_mode<synchronous>, transform_indices = @transform_2, window_bounds = array<i64: 32, 32>}, {pipeline_mode = #tpu.pipeline_mode<synchronous>, transform_indices = @transform_3, window_bounds = array<i64: 1, 32>}, {pipeline_mode = #tpu.pipeline_mode<synchronous>, transform_indices = @transform_4, window_bounds = array<i64: 32, 64>}, {pipeline_mode = #tpu.pipeline_mode<synchronous>, transform_indices = @transform_5, window_bounds = array<i64: 1, 64>}, {transform_indices = @transform_6, window_bounds = array<i64: 1, 8, 32>}]} {
    %c0_i32 = arith.constant 0 : i32
    %0 = arith.cmpi eq, %arg1, %c0_i32 : i32
    %1 = arith.extui %0 : i1 to i32
    %c0_i32_0 = arith.constant 0 : i32
    %2 = arith.cmpi ne, %1, %c0_i32_0 : i32
    scf.if %2 {
      %c0_25 = arith.constant 0 : index
      %c0_26 = arith.constant 0 : index
      %c0_27 = arith.constant 0 : index
      %47 = vector.load %arg2[%c0_25, %c0_26, %c0_27] : memref<1x8x32xbf16, #tpu.memory_space<vmem>>, vector<1x8x32xbf16>
      %48 = vector.shape_cast %47 : vector<1x8x32xbf16> to vector<8x32xbf16>
      %c0_28 = arith.constant 0 : index
      %c0_29 = arith.constant 0 : index
      %49 = vector.load %arg6[%c0_28, %c0_29] : memref<32x64xbf16, #tpu.memory_space<vmem>>, vector<32x64xbf16>
      %cst_30 = arith.constant dense<0.000000e+00> : vector<8x64xf32>
      %50 = tpu.matmul %48, %49, %cst_30 {dimension_numbers = #tpu.dot_dimension_numbers<[1], [0], [0], [1], [0, 0, 1, 1], [], []>} : vector<8x32xbf16>, vector<32x64xbf16>, vector<8x64xf32> -> vector<8x64xf32>
      %c0_31 = arith.constant 0 : index
      %c0_32 = arith.constant 0 : index
      %51 = vector.load %arg7[%c0_31, %c0_32] : memref<1x64xf32, #tpu.memory_space<vmem>>, vector<1x64xf32>
      %52 = vector.broadcast %51 : vector<1x64xf32> to vector<8x64xf32>
      %53 = arith.addf %50, %52 : vector<8x64xf32>
      %54 = arith.truncf %53 : vector<8x64xf32> to vector<8x64xbf16>
      %55 = vector.extract_strided_slice %54 {offsets = [0, 0], sizes = [8, 32], strides = [1, 1]} : vector<8x64xbf16> to vector<8x32xbf16>
      %56 = vector.extract_strided_slice %54 {offsets = [0, 32], sizes = [8, 32], strides = [1, 1]} : vector<8x64xbf16> to vector<8x32xbf16>
      %57 = vector.shape_cast %55 : vector<8x32xbf16> to vector<8x4x8xbf16>
      %58 = tpu.transpose %57, [1, 0, 2] : vector<8x4x8xbf16> -> vector<4x8x8xbf16>
      %c0_33 = arith.constant 0 : index
      %c0_34 = arith.constant 0 : index
      %c0_35 = arith.constant 0 : index
      %59 = vector.load %arg9[%c0_33, %c0_34, %c0_35] : memref<4x8x8xbf16, #tpu.memory_space<vmem>>, vector<4x8x8xbf16>
      tpu.vector_store %arg9[%c0_33, %c0_34, %c0_35], %58 {strides = array<i32>} : memref<4x8x8xbf16, #tpu.memory_space<vmem>>, vector<4x8x8xbf16>,
      %60 = vector.shape_cast %56 : vector<8x32xbf16> to vector<8x4x8xbf16>
      %61 = tpu.transpose %60, [1, 0, 2] : vector<8x4x8xbf16> -> vector<4x8x8xbf16>
      %c0_36 = arith.constant 0 : index
      %c0_37 = arith.constant 0 : index
      %c0_38 = arith.constant 0 : index
      %62 = vector.load %arg10[%c0_36, %c0_37, %c0_38] : memref<4x8x8xbf16, #tpu.memory_space<vmem>>, vector<4x8x8xbf16>
      tpu.vector_store %arg10[%c0_36, %c0_37, %c0_38], %61 {strides = array<i32>} : memref<4x8x8xbf16, #tpu.memory_space<vmem>>, vector<4x8x8xbf16>,
    } else {
    }
    %c8_i32 = arith.constant 8 : i32
    %3 = arith.muli %arg1, %c8_i32 : i32
    %4 = tpu.assume_multiple %3, 8 : i32
    %c0 = arith.constant 0 : index
    %5 = arith.index_cast %4 : i32 to index
    %c0_1 = arith.constant 0 : index
    %6 = vector.load %arg2[%c0, %5, %c0_1] : memref<1x8x32xbf16, #tpu.memory_space<vmem>>, vector<1x8x32xbf16>
    %7 = vector.shape_cast %6 : vector<1x8x32xbf16> to vector<8x32xbf16>
    %c0_2 = arith.constant 0 : index
    %c0_3 = arith.constant 0 : index
    %8 = vector.load %arg4[%c0_2, %c0_3] : memref<32x32xbf16, #tpu.memory_space<vmem>>, vector<32x32xbf16>
    %cst = arith.constant dense<0.000000e+00> : vector<8x32xf32>
    %9 = tpu.matmul %7, %8, %cst {dimension_numbers = #tpu.dot_dimension_numbers<[1], [0], [0], [1], [0, 0, 1, 1], [], []>} : vector<8x32xbf16>, vector<32x32xbf16>, vector<8x32xf32> -> vector<8x32xf32>
    %c0_4 = arith.constant 0 : index
    %c0_5 = arith.constant 0 : index
    %10 = vector.load %arg5[%c0_4, %c0_5] : memref<1x32xf32, #tpu.memory_space<vmem>>, vector<1x32xf32>
    %11 = vector.broadcast %10 : vector<1x32xf32> to vector<8x32xf32>
    %12 = arith.addf %9, %11 : vector<8x32xf32>
    %cst_6 = arith.constant 0.353553385 : f32
    %13 = vector.broadcast %cst_6 : f32 to vector<8x32xf32>
    %14 = arith.mulf %12, %13 : vector<8x32xf32>
    %15 = vector.shape_cast %14 : vector<8x32xf32> to vector<8x4x8xf32>
    %16 = tpu.transpose %15, [1, 0, 2] : vector<8x4x8xf32> -> vector<4x8x8xf32>
    %17 = arith.truncf %16 : vector<4x8x8xf32> to vector<4x8x8xbf16>
    %c0_7 = arith.constant 0 : index
    %c0_8 = arith.constant 0 : index
    %c0_9 = arith.constant 0 : index
    %18 = vector.load %arg9[%c0_7, %c0_8, %c0_9] : memref<4x8x8xbf16, #tpu.memory_space<vmem>>, vector<4x8x8xbf16>
    "tpu.trace_start"() <{level = 10 : i32, message = "hqd,hkd->hqk"}> : () -> ()
    %cst_10 = arith.constant dense<0.000000e+00> : vector<4x8x8xf32>
    %19 = tpu.matmul %17, %18, %cst_10 {dimension_numbers = #tpu.dot_dimension_numbers<[2], [2], [1], [1], [0, 0, 0, 1, 1, 1], [0], [0]>} : vector<4x8x8xbf16>, vector<4x8x8xbf16>, vector<4x8x8xf32> -> vector<4x8x8xf32>
    "tpu.trace_stop"() : () -> ()
    %c0_11 = arith.constant 0 : index
    %c0_12 = arith.constant 0 : index
    %c0_13 = arith.constant 0 : index
    %20 = vector.load %arg3[%c0_11, %c0_12, %c0_13] : memref<1x1x8xf32, #tpu.memory_space<vmem>>, vector<1x1x8xf32>
    %21 = vector.shape_cast %20 : vector<1x1x8xf32> to vector<1x8xf32>
    %cst_14 = arith.constant 1.000000e+00 : f32
    %22 = vector.broadcast %cst_14 : f32 to vector<1x8xf32>
    %23 = arith.subf %22, %21 : vector<1x8xf32>
    %cst_15 = arith.constant -1.000000e+04 : f32
    %24 = vector.broadcast %cst_15 : f32 to vector<1x8xf32>
    %25 = arith.mulf %23, %24 : vector<1x8xf32>
    %26 = vector.shape_cast %25 : vector<1x8xf32> to vector<1x1x8xf32>
    %27 = vector.broadcast %26 : vector<1x1x8xf32> to vector<4x8x8xf32>
    %28 = arith.addf %19, %27 : vector<4x8x8xf32>
    %cst_16 = arith.constant dense<0xFF800000> : vector<4x8xf32>
    %29 = vector.multi_reduction <maximumf>, %28, %cst_16 [2] : vector<4x8x8xf32> to vector<4x8xf32>
    %30 = vector.shape_cast %29 : vector<4x8xf32> to vector<4x8x1xf32>
    %31 = vector.broadcast %30 : vector<4x8x1xf32> to vector<4x8x8xf32>
    %32 = arith.subf %28, %31 : vector<4x8x8xf32>
    %33 = math.exp %32 : vector<4x8x8xf32>
    %cst_17 = arith.constant dense<0.000000e+00> : vector<4x8xf32>
    %34 = vector.multi_reduction <add>, %33, %cst_17 [2] : vector<4x8x8xf32> to vector<4x8xf32>
    %35 = vector.shape_cast %34 : vector<4x8xf32> to vector<4x8x1xf32>
    %36 = tpu.reciprocal %35 {approx = true} : vector<4x8x1xf32> -> vector<4x8x1xf32>
    %37 = vector.broadcast %36 : vector<4x8x1xf32> to vector<4x8x8xf32>
    %38 = arith.mulf %33, %37 : vector<4x8x8xf32>
    %39 = arith.truncf %38 : vector<4x8x8xf32> to vector<4x8x8xbf16>
    %c0_18 = arith.constant 0 : index
    %c0_19 = arith.constant 0 : index
    %c0_20 = arith.constant 0 : index
    %40 = vector.load %arg10[%c0_18, %c0_19, %c0_20] : memref<4x8x8xbf16, #tpu.memory_space<vmem>>, vector<4x8x8xbf16>
    "tpu.trace_start"() <{level = 10 : i32, message = "hqk,hkd->hqd"}> : () -> ()
    %cst_21 = arith.constant dense<0.000000e+00> : vector<4x8x8xf32>
    %41 = tpu.matmul %39, %40, %cst_21 {dimension_numbers = #tpu.dot_dimension_numbers<[2], [1], [1], [2], [0, 0, 0, 1, 1, 2], [0], [0]>} : vector<4x8x8xbf16>, vector<4x8x8xbf16>, vector<4x8x8xf32> -> vector<4x8x8xf32>
    "tpu.trace_stop"() : () -> ()
    %42 = tpu.transpose %41, [1, 0, 2] : vector<4x8x8xf32> -> vector<8x4x8xf32>
    %43 = vector.shape_cast %42 : vector<8x4x8xf32> to vector<8x32xf32>
    %c0_22 = arith.constant 0 : index
    %c0_23 = arith.constant 0 : index
    %c0_24 = arith.constant 0 : index
    %44 = vector.load %arg8[%c0_22, %c0_23, %c0_24] : memref<1x8x32xf32, #tpu.memory_space<vmem>>, vector<1x8x32xf32>
    %45 = vector.shape_cast %44 : vector<1x8x32xf32> to vector<8x32xf32>
    %46 = vector.shape_cast %43 : vector<8x32xf32> to vector<1x8x32xf32>
    tpu.vector_store %arg8[%c0_22, %c0_23, %c0_24], %46 {strides = array<i32>} : memref<1x8x32xf32, #tpu.memory_space<vmem>>, vector<1x8x32xf32>,
    return
  }
  func.func @transform_0(%arg0: i32, %arg1: i32) -> (i32, i32, i32) {
    %c0_i32 = arith.constant 0 : i32
    %c0_i32_0 = arith.constant 0 : i32
    %c0_i32_1 = arith.constant 0 : i32
    return %arg0, %c0_i32, %c0_i32_0 : i32, i32, i32
  }
  func.func @transform_1(%arg0: i32, %arg1: i32) -> (i32, i32, i32) {
    %c0_i32 = arith.constant 0 : i32
    %c0_i32_0 = arith.constant 0 : i32
    %c0_i32_1 = arith.constant 0 : i32
    return %arg0, %c0_i32, %c0_i32_0 : i32, i32, i32
  }
  func.func @transform_2(%arg0: i32, %arg1: i32) -> (i32, i32) {
    %c0_i32 = arith.constant 0 : i32
    %c0_i32_0 = arith.constant 0 : i32
    %c0_i32_1 = arith.constant 0 : i32
    return %c0_i32, %c0_i32_0 : i32, i32
  }
  func.func @transform_3(%arg0: i32, %arg1: i32) -> (i32, i32) {
    %c0_i32 = arith.constant 0 : i32
    %c0_i32_0 = arith.constant 0 : i32
    %c0_i32_1 = arith.constant 0 : i32
    return %c0_i32, %c0_i32_0 : i32, i32
  }
  func.func @transform_4(%arg0: i32, %arg1: i32) -> (i32, i32) {
    %c0_i32 = arith.constant 0 : i32
    %c0_i32_0 = arith.constant 0 : i32
    %c0_i32_1 = arith.constant 0 : i32
    return %c0_i32, %c0_i32_0 : i32, i32
  }
  func.func @transform_5(%arg0: i32, %arg1: i32) -> (i32, i32) {
    %c0_i32 = arith.constant 0 : i32
    %c0_i32_0 = arith.constant 0 : i32
    %c0_i32_1 = arith.constant 0 : i32
    return %c0_i32, %c0_i32_0 : i32, i32
  }
  func.func @transform_6(%arg0: i32, %arg1: i32) -> (i32, i32, i32) {
    %c0_i32 = arith.constant 0 : i32
    %c0_i32_0 = arith.constant 0 : i32
    return %arg0, %arg1, %c0_i32 : i32, i32, i32
  }
}

</mosaic_0001>

<bundles_post_ra>
// kernel: tpu_custom_call.1
= control target key start
LH: loop header
LB: loop body
LE: loop exit
PB: predicated region body
PF: predicated region fallthrough
CT: control target
= control target key end

     0   :  { %11 = vsyncpa [#allocation5], 0  ;;  %s2603_s0 = inlined_call_operand.hbm [shape: bf16[2,8,32], index: 0, kind: input, shape index: {}]   ;;  %s2604_s1 = inlined_call_operand.vmem [shape: f32[2,1,8], index: 1, kind: input, shape index: {}]   ;;  %s2605_s2 = inlined_call_operand.hbm [shape: bf16[32,32], index: 2, kind: input, shape index: {}]   ;;  %s2606_s3 = inlined_call_operand.vmem [shape: f32[1,32], index: 3, kind: input, shape index: {}]   ;;  %s2607_s4 = inlined_call_operand.hbm [shape: bf16[32,64], index: 4, kind: input, shape index: {}]   ;;  %s2608_s5 = inlined_call_operand.vmem [shape: f32[1,64], index: 5, kind: input, shape index: {}]   ;;  %s2609_s6 = inlined_call_operand.hbm [shape: f32[2,8,32], index: 6, kind: output, shape index: {}]  }
   0x1   :  { %13 = vsyncpa [#allocation5 + $0x1], 0 }
   0x2   :  { %14 = vsyncpa [#allocation8], 0 }
   0x3   :  { %15 = vsyncpa [#allocation6], 0 }
   0x4   :  { %17 = vsyncpa [#allocation6 + $0x1], 0  ;;  %s2157_s21 = smov 0   ;;  %s2159_s22 = smov 0  }
   0x5   :  { %s2161_s23 = smov 0   ;;  %s2163_s24 = smov 0  }
   0x6   :  { %s2165_s25 = smov 0   ;;  %s2167_s26 = smov 0  }
   0x7 LB: > { %s1690_s27 = sadd.s32 4294967295, %s2102_s26   ;;  %s1691_s28 = sadd.s32 4294967294, %s2102_s26   ;;  %s2102_s26 = sphi %s2167_s26, %s23_s26   ;;  %s2098_s25 = sphi %s2165_s25, %s2634_s25   ;;  %s2094_s24 = sphi %s2163_s24, %s2633_s24   ;;  %s2090_s23 = sphi %s2161_s23, %s2632_s23   ;;  %s2086_s22 = sphi %s2159_s22, %s2631_s22   ;;  %s2082_s21 = sphi %s2157_s21, %s2630_s21  }
   0x8   : > { %p55_p0 = scmp.ne.s32.totalorder %s2086_s22, %s2082_s21  ;;  %p2191_p1 = scmp.eq.s32.totalorder %s1690_s27, 0 }
   0x9   : > { %p2195_p2 = scmp.eq.s32.totalorder %s1690_s27, 1  ;;  %p197_p3 = scmp.eq.s32.totalorder %s1691_s28, 1 }
   0xa   : > { %s2615_s29 = scalar_select %p2191_p1, 1, 0 }
   0xb   : > { %p2201_p4 = por %p2191_p1, %p55_p0  ;;  %p1692_p5 = scmp.ge.s32.totalorder %s2102_s26, 1 }
   0xc   : > { %p2206_p6 = por %p197_p3, %p55_p0  ;;  %p204_p7 = scmp.lt.s32.totalorder %s2102_s26, 3 }
   0xd   : > { %s2617_s7 = scalar_select %p2201_p4, 1, 0 }
   0xe   : > { %s2618_s8 = scalar_select %p2206_p6, 1, 0 }
   0xf   : > { %p2211_p8 = pnand %p1692_p5, %p204_p7  ;;  %s2104_s10 = smov [#allocation7]  }
  0x10   : > { %2619 = sst [smem:[#allocation14_spill]] %s2618_s8  ;;  %s216_s11 = sshll.u32 %s2104_s10, 4  ;;  %s2215_s11 = int_to_ptr.vmem [resolvable:$true] %s216_s11 }
  0x11   : > { %p1825_p9 = pneg %p2211_p8  ;;  %s2105_s13 = smov [#allocation9]  }
  0x12   : > { %s232_s14 = sshll.u32 %s2105_s13, 4  ;;  %s1930_s17 = scalar_lea.hbm %s2605_s2, 256  ;;  %s2226_s14 = int_to_ptr.vmem [resolvable:$true] %s232_s14 }
  0x13   : > { %p2222_p11 = pnand %p1825_p9, %p2191_p1  ;;  %p1931_p12 = scmp.ne.s32.totalorder %s2605_s2, %s1930_s17 }
  0x14   : > { %p1937_p5 = scmp.lt.u32.totalorder %s1930_s17, %s2605_s2 }
  0x15   : > { %p1932_p13 = pneg %p2222_p11 }
  0x17   : > { %p1933_p0 = pnand %p1932_p13, %p1931_p12 }
  0x19   : > { %p1934_p3 = pneg %p1933_p0 }
  0x1b   : > { %p1939_p7 = pnand %p1937_p5, %p1934_p3 }
  0x1d   : > { %1942 = shalt.err (!%p1939_p7)
}
  0x1e   : > { %s1943_s28 = scalar_lea.vmem %s2215_s11, 256  ;;  %p1951_p1 = scmp.lt.s32.totalorder %s2215_s11, %s2215_s11 }
  0x1f   : > { %p1944_p9 = scmp.ne.s32.totalorder %s2215_s11, %s1943_s28  ;;  %p1952_p12 = scmp.lt.s32.totalorder %s1943_s28, %s1943_s28 }
  0x21   : > { %p1946_p10 = pnand %p1944_p9, %p1932_p13  ;;  %p1953_p0 = por %p1952_p12, %p1951_p1 }
  0x23   : > { %p1947_p6 = pneg %p1946_p10 }
  0x25   : > { %p1954_p4 = pnand %p1953_p0, %p1947_p6 }
  0x27   : > { %1957 = shalt.err (!%p1954_p4)
}
  0x28   : > { %s2106_s10 = smov 64   ;;  %s2107_s13 = smov 4  }
  0x29   : > { %1828 = dma.hbm_to_vmem [thread:$0]  (!%p2222_p11), %s2605_s2, 256, %s2215_s11, [#allocation8], %s2106_s10, %s2106_s10, %s2107_s13  }
  0x2a   : > { %s1958_s19 = scalar_lea.hbm %s2607_s4, 256 }
  0x2b   : > { %p1959_p1 = scmp.ne.s32.totalorder %s2607_s4, %s1958_s19  ;;  %p1965_p10 = scmp.lt.u32.totalorder %s1958_s19, %s2607_s4 }
  0x2d   : > { %p1961_p4 = pnand %p1959_p1, %p1932_p13 }
  0x2f   : > { %p1962_p6 = pneg %p1961_p4 }
  0x31   : > { %p1967_p3 = pnand %p1965_p10, %p1962_p6 }
  0x33   : > { %1970 = shalt.err (!%p1967_p3)
}
  0x34   : > { %s1971_s11 = scalar_lea.vmem %s2226_s14, 256  ;;  %p1979_p12 = scmp.lt.s32.totalorder %s2226_s14, %s2226_s14 }
  0x35   : > { %p1972_p5 = scmp.ne.s32.totalorder %s2226_s14, %s1971_s11  ;;  %p1980_p0 = scmp.lt.s32.totalorder %s1971_s11, %s1971_s11 }
  0x37   : > { %p1974_p7 = pnand %p1972_p5, %p1932_p13  ;;  %p1981_p1 = por %p1980_p0, %p1979_p12 }
  0x39   : > { %p1975_p9 = pneg %p1974_p7 }
  0x3b   : > { %p1982_p4 = pnand %p1981_p1, %p1975_p9 }
  0x3d   : > { %1985 = shalt.err (!%p1982_p4)
}
  0x3e   : > { %1831 = dma.hbm_to_vmem [thread:$0]  (!%p2222_p11), %s2607_s4, 256, %s2226_s14, [#allocation8], %s2106_s10, %s2106_s10, %s2107_s13  }
  0x3f   : > { %s35_s16 = sadd.s32 1, %s2098_s25  ;;  %s42_s17 = sadd.s32 1, %s2090_s23 }
  0x40   : > { %p37_p13 = scmp.ge.s32.totalorder %s35_s16, 2  ;;  %p49_p6 = scmp.ne.s32.totalorder %s2090_s23, %s2086_s22 }
  0x41   : > { %p50_p10 = scmp.eq.s32.totalorder %s2102_s26, 0  ;;  %p1842_p3 = scmp.lt.s32.totalorder %s2102_s26, 2 }
  0x42   : > { %s2636_s16 = smov (%p37_p13, %s35_s16), 0  ;;  %p2290_p7 = por %p2195_p2, %p49_p6 }
  0x43   : > { %p51_p5 = por %p50_p10, %p49_p6  ;;  %s39_s18 = ssub.s32 %s2098_s25, %s2636_s16 }
  0x44   : > { %s2622_s12 = scalar_select %p2290_p7, 1, 0 }
  0x45   : > { %s249_s19 = sand.u32 1, %s2090_s23   ;;  %p40_p9 = scmp.eq.s32.totalorder %s39_s18, 0 }
  0x46   : > { %s1696_s14 = sshll.u32 %s249_s19, 2  ;;  %s1697_s10 = sshll.u32 %s2098_s25, 6 }
  0x47   : > { %s2299_s13 = scalar_select %p40_p9, %s2090_s23, %s42_s17  }
  0x48   : > { %s2304_s28 = scalar_lea.hbm %s2603_s0, %s1697_s10  ;;  %s253_s30 = scalar_lea.vmem [#allocation4], %s1696_s14 }
  0x49   : > { %s260_s11 = sshll.u32 %s253_s30, 4  ;;  %p2308_p2 = pnand %p1842_p3, %p51_p5  ;;  %s2312_s11 = int_to_ptr.vmem [resolvable:$true] %s260_s11 }
  0x4a   : > { %s250_s15 = scalar_lea.sflag [#allocation5], %s249_s19  ;;  %s1986_s17 = scalar_lea.hbm %s2304_s28, 64 }
  0x4b   : > { %p1987_p11 = scmp.ne.s32.totalorder %s2304_s28, %s1986_s17  ;;  %p1988_p12 = pneg %p2308_p2 }
  0x4c   : > { %s1991_s10 = scalar_lea.hbm %s2603_s0, 128  ;;  %p1992_p4 = scmp.lt.u32.totalorder %s2304_s28, %s2603_s0 }
  0x4d   : > { %p1989_p0 = pnand %p1988_p12, %p1987_p11  ;;  %p1993_p13 = scmp.lt.u32.totalorder %s1991_s10, %s1986_s17 }
  0x4e   : > { %p1995_p10 = scmp.lt.u32.totalorder %s1986_s17, %s2304_s28 }
  0x4f   : > { %p1990_p1 = pneg %p1989_p0  ;;  %p1994_p6 = por %p1993_p13, %p1992_p4 }
  0x51   : > { %p1996_p3 = por %p1995_p10, %p1994_p6 }
  0x53   : > { %p1997_p5 = pnand %p1996_p3, %p1990_p1 }
  0x55   : > { %2000 = shalt.err (!%p1997_p5)
}
  0x56   : > { %s2001_s19 = scalar_lea.vmem %s2312_s11, 64  ;;  %s2108_s30 = smov [#allocation4]  }
  0x57   : > { %p2002_p9 = scmp.ne.s32.totalorder %s2312_s11, %s2001_s19  ;;  %s2006_s18 = sshll.u32 %s2108_s30, 4  ;;  %s2007_s18 = int_to_ptr.vmem [resolvable:$false] %s2006_s18 }
  0x58   : > { %s2008_s14 = scalar_lea.vmem %s2007_s18, 128  ;;  %p2009_p7 = scmp.lt.s32.totalorder %s2312_s11, %s2007_s18 }
  0x59   : > { %p2004_p11 = pnand %p2002_p9, %p1988_p12  ;;  %p2010_p4 = scmp.lt.s32.totalorder %s2008_s14, %s2001_s19 }
  0x5b   : > { %p2005_p0 = pneg %p2004_p11  ;;  %p2011_p13 = por %p2010_p4, %p2009_p7 }
  0x5d   : > { %p2012_p6 = pnand %p2011_p13, %p2005_p0 }
  0x5f   : > { %2015 = shalt.err (!%p2012_p6)
}
  0x60   : > { %1835 = dma.hbm_to_vmem [thread:$0]  (!%p2308_p2), %s2304_s28, 64, %s2312_s11, %s250_s15  }
  0x61   : > { %275 = sbr.rel (%p2211_p8) target bundleno = 1398 (0x576), region = 44  ;;  %s2342_s17 = sand.u32 (!%p2211_p8), 1, %s2086_s22  }
  0x62   : > { %s1699_s10 = sshll.u32 (!%p2211_p8), %s2342_s17, 2  ;;  %s278_s20 = scalar_lea.sflag (!%p2211_p8), [#allocation5], %s2342_s17 }
  0x63   : > { %s281_s27 = scalar_lea.vmem (!%p2211_p8), [#allocation4], %s1699_s10  ;;  %p2624_p7 = scmp.ne.s32.totalorder (!%p2211_p8), %s2617_s7, 0 }
  0x68   : > { %2069 = dma.done.wait (%p2624_p7), %s278_s20, 64  }
  0x69   : > { %2071 = vsyncadd (%p2624_p7), %s278_s20, 4294967232  ;;  %p2625_p12 = scmp.ne.s32.totalorder %s2615_s29, 0 }
  0x6b   : > { %2073 = dma.done.wait (%p2625_p12), [#allocation8], 512  }
  0x6c   : > { %2075 = vsyncadd (%p2625_p12), [#allocation8], 4294966784  ;;  %v2109_v0 = vmov 0.0   ;;  %vm2110_vm0 = vmmov 0   ;;  %v1910_v1 = vld [vmem:[#allocation9] sm:$0xff]   ;;  %v1911_v2 = vld [vmem:[#allocation9 + $0x8] sm:$0xff]   ;;  %v408_v23 = vlaneseq }
  0x6d   : > { %1749 = vmatprep.subr.bf16.mxu0 %v2109_v0  ;;  %1757 = vmatprep.subr.bf16.mxu1 %v2109_v0  ;;  %v1912_v3 = vld [vmem:[#allocation7] sm:$0xff]   ;;  %v1913_v4 = vld [vmem:[#allocation7 + $0x8] sm:$0xff]   ;;  %v329_v5 = vld [vmem:[%s281_s27] sm:$0xf]  ;;  %vm353_vm1 = vcmask 261120   ;;  %s2111_s11 = smov 104  }
  0x6e   : > { %1753 = vmatprep.mubr.msk.bf16.mxu0 %vm2110_vm0, %v2109_v0  ;;  %1761 = vmatprep.mubr.msk.bf16.mxu1 %vm2110_vm0, %v2109_v0  ;;  %v758_v6 = vld [vmem:[%s281_s27] sm:$0xf]  ;;  %s2112_s8 = smov 120   ;;  %s2113_s15 = smov 112   ;;  %v2114_v21 = vmov 1983009808  }
  0x6f   : > { %1750 = vmatpush3.bf16.msra.mxu0 %v1910_v1  ;;  %1758 = vmatpush3.bf16.msra.mxu1 %v1912_v3  ;;  %v1703_v7 = vld [vmem:[%s2608_s5] ss:$0 sm:$0xff]  ;;  %v406_v22 = vunpack.c.l.s4 %v2114_v21  ;;  %v2115_v24 = vmov 1934713408   ;;  %v2381_v27 = vshrl.u32 %v408_v23, 7  ;;  %v2116_v43 = vmov 0  }
  0x70   : > { %1751 = vmatprep.subr.bf16.mxu0 %v2109_v0  ;;  %1759 = vmatprep.subr.bf16.mxu1 %v2109_v0  ;;  %v1707_v9 = vld [vmem:[%s2606_s3] ss:$0 sm:$0xff]  ;;  %v423_v25 = vunpack.c.l.s4 %v2115_v24  ;;  %vm570_vm2 = vcmask 60416   ;;  %vm990_vm3 = vcmask 64512   ;;  %p321_p8 = scmp.lt.s32.totalorder %s2094_s24, 1  ;;  %s2117_s10 = smov 96  }
  0x71   : > { %v407_v26 = vunpack.c.0.s8 %v406_v22  ;;  %vm1230_vm4 = vcmask 1043456   ;;  %s2118_s20 = smov 16   ;;  %s2119_s27 = smov 8   ;;  %vm1561_vm5 = vcmask 130048   ;;  %vm1563_vm6 = vcmask 195584  }
  0x72   : > { %v424_v28 = vunpack.c.0.s8 %v423_v25  ;;  %s322_s19 = scalar_select %p321_p8, %s2094_s24, 1 }
  0x73   : > { %1752 = vmatpush3.bf16.msra.mxu0 %v1911_v2  ;;  %1760 = vmatpush3.bf16.msra.mxu1 %v1913_v4  ;;  %v2384_v29 = vsub.s32 %v407_v26, %v2381_v27  ;;  %s2120_s29 = smov 24   ;;  %s1702_s7 = sshll.u32 %s2342_s17, 3 }
  0x74   : > { %1765 = vmatprep.subr.bf16.mxu0 %v2109_v0  ;;  %1771 = vmatprep.subr.bf16.mxu1 %v2109_v0  ;;  %v2393_v33 = vsub.s32 %v424_v28, %v2381_v27  ;;  %s323_s14 = scalar_lea.vmem %s2604_s1, %s322_s19  ;;  %s1724_s9 = sshll.u32 %s2094_s24, 7 }
  0x75   : > { %s320_s28 = scalar_lea.vmem [#allocation10], %s1702_s7  ;;  %s2553_s19 = scalar_lea.hbm %s2609_s6, %s1724_s9 }
  0x76   : > { %1754 = vmatmul.mubr.msk.bf16.vlgmr.msra.gmra.mrb[0].mxu0 %vm353_vm1, %v329_v5  ;;  %1762 = vmatmul.mubr.msk.bf16.vlgmr.msra.gmra.mrb[0].mxu1 %vm353_vm1, %v758_v6  ;;  %s1567_s30 = scalar_lea.sflag [#allocation6], %s2342_s17  ;;  %p2626_p1 = scmp.ne.s32.totalorder %s2622_s12, 0 }
  0x77   : > { %1767 = vmatprep.mubr.msk.bf16.mxu0 %vm2110_vm0, %v2109_v0  ;;  %1773 = vmatprep.mubr.msk.bf16.mxu1 %vm2110_vm0, %v2109_v0  ;;  %s2121_s18 = smov [#allocation10]  }
 0x149   : > { %v391_v8 = vpop.f32.mrb[0].mxu0  ;;  %v820_v13 = vpop.f32.mrb[0].mxu1 }
 0x14a   : > { %v392_v10 = vadd.f32 %v1703_v7, %v391_v8  ;;  %v1755_v11 = vpop.f32.mrb[1].mxu0  ;;  %v821_v16 = vadd.f32 %v1707_v9, %v820_v13  ;;  %v1763_v17 = vpop.f32.mrb[1].mxu1 }
 0x14b   : > { %v394_v12 = vpop.f32.mrb[2].mxu0  ;;  %v823_v18 = vpop.f32.mrb[2].mxu1 }
 0x14c   : > { %v2376_v14 = vpack.c.bf16 %v392_v10, %v392_v10  ;;  %v1756_v15 = vpop.f32.mrb[3].mxu0  ;;  %v826_v19 = vmul.f32 0.35355338, %v821_v16  ;;  %v1764_v20 = vpop.f32.mrb[3].mxu1 }
 0x14e   : > { %403 = vrot.lane.b32.xlu1 %v2376_v14, %s2111_s11  ;;  %399 = vrot.lane.b32.xlu0 %v2376_v14, %s2112_s8  ;;  %v411_v42 = vrot.slane %v2376_v14, %v2384_v29 }
 0x152   : > { %828 = vrot.lane.b32.xlu1 %v826_v19, %s2112_s8  ;;  %401 = vrot.lane.b32.xlu0 %v2376_v14, %s2113_s15 }
 0x156   : > { %834 = vrot.lane.b32.xlu1 %v826_v19, %s2111_s11  ;;  %831 = vrot.lane.b32.xlu0 %v826_v19, %s2113_s15  ;;  %s1581_s11 = sshll.u32 %s320_s28, 4  ;;  %s2555_s11 = int_to_ptr.vmem [resolvable:$true] %s1581_s11 }
 0x157   : > { %s2016_s24 = scalar_lea.vmem %s2555_s11, 128 }
 0x158   : > { %p2017_p2 = scmp.ne.s32.totalorder %s2555_s11, %s2016_s24 }
 0x15a   : > { %p2018_p10 = pnand %p2017_p2, %p2626_p1 }
 0x15c   : > { %p2019_p3 = pneg %p2018_p10 }
 0x1c0   : > { %v2386_v30 = vpop.permute.xlu1 %403  ;;  %v2388_v31 = vpop.permute.xlu0 %399 }
 0x1c1   : > { %v453_v32 = vrot.slane %v2386_v30, %v2384_v29  ;;  %v445_v34 = vrot.slane %v2388_v31, %v2384_v29 }
 0x1c3   : > { %v454_v35 = vcombine.low %v445_v34, %v453_v32  ;;  %v455_v36 = vcombine.high %v445_v34, %v453_v32 }
 0x1c4   : > { %v829_v37 = vpop.permute.xlu1 %828  ;;  %v2397_v38 = vpop.permute.xlu0 %401 }
 0x1c5   : > { %v462_v39 = vrot.slane %v454_v35, %v2393_v33  ;;  %v469_v40 = vrot.slane %v455_v36, %v2393_v33  ;;  %v419_v41 = vrot.slane %v2397_v38, %v2384_v29 }
 0x1c7   : > { %v470_v44 = vcombine.high %v462_v39, %v2116_v43  ;;  %v471_v45 = vcombine.high %v469_v40, %v2116_v43  ;;  %v420_v46 = vcombine.low %v411_v42, %v419_v41  ;;  %v421_v47 = vcombine.high %v411_v42, %v419_v41 }
 0x1c8   : > { %v835_v48 = vpop.permute.xlu1 %834  ;;  %v832_v49 = vpop.permute.xlu0 %831  ;;  %v477_v50 = vshrl.u32 %v462_v39, 16  ;;  %v493_v51 = vshrl.u32 %v469_v40, 16 }
 0x1c9   : > { %v853_v52 = vcombine.low %v829_v37, %v835_v48  ;;  %v854_v53 = vcombine.high %v829_v37, %v835_v48  ;;  %v428_v54 = vrot.slane %v420_v46, %v2393_v33  ;;  %v435_v55 = vrot.slane %v421_v47, %v2393_v33 }
 0x1ca   : > { %v837_v56 = vcombine.low %v826_v19, %v832_v49  ;;  %v838_v57 = vcombine.high %v826_v19, %v832_v49  ;;  %v485_v58 = vshrl.u32 %v470_v44, 16  ;;  %v501_v59 = vshrl.u32 %v471_v45, 16 }
 0x1cb   : > { %v861_v60 = vrot.slane %v853_v52, %v2384_v29  ;;  %v868_v61 = vrot.slane %v854_v53, %v2384_v29  ;;  %v436_v62 = vcombine.high %v428_v54, %v2116_v43  ;;  %v437_v63 = vcombine.high %v435_v55, %v2116_v43 }
 0x1cc   : > { %v474_v1 = vpack.i.b16 %v462_v39, %v428_v54  ;;  %v476_v2 = vshrl.u32 %v428_v54, 16  ;;  %v490_v3 = vpack.i.b16 %v469_v40, %v435_v55  ;;  %v492_v4 = vshrl.u32 %v435_v55, 16 }
 0x1cd   : > { %v845_v5 = vrot.slane %v837_v56, %v2384_v29  ;;  %v852_v6 = vrot.slane %v838_v57, %v2384_v29  ;;  %v482_v8 = vpack.i.b16 %v470_v44, %v436_v62  ;;  %v484_v9 = vshrl.u32 %v436_v62, 16 }
 0x1ce   : > { %v478_v7 = vpack.i.b16 %v477_v50, %v476_v2  ;;  %v498_v10 = vpack.i.b16 %v471_v45, %v437_v63  ;;  %v494_v11 = vpack.i.b16 %v493_v51, %v492_v4  ;;  %v500_v12 = vshrl.u32 %v437_v63, 16 }
 0x1cf   : > { %v504_v13 = vcombine.low %v474_v1, %v490_v3  ;;  %v869_v15 = vcombine.low %v845_v5, %v861_v60  ;;  %v486_v16 = vpack.i.b16 %v485_v58, %v484_v9  ;;  %v870_v18 = vcombine.high %v845_v5, %v861_v60 }
 0x1d0   : > { %v512_v17 = vcombine.low %v482_v8, %v498_v10  ;;  %v885_v19 = vcombine.low %v852_v6, %v868_v61  ;;  %v502_v20 = vpack.i.b16 %v501_v59, %v500_v12  ;;  %v529_v22 = vcombine.low %v478_v7, %v494_v11 }
 0x1d1   : > { %v511_v21 = vrot.slane %v504_v13, %v2384_v29  ;;  %v877_v23 = vrot.slane %v869_v15, %v2393_v33  ;;  %v884_v25 = vrot.slane %v870_v18, %v2393_v33  ;;  %v886_v26 = vcombine.high %v852_v6, %v868_v61 }
 0x1d2   : > { %v519_v24 = vrot.slane %v512_v17, %v2384_v29  ;;  %v893_v28 = vrot.slane %v885_v19, %v2393_v33  ;;  %v537_v32 = vcombine.low %v486_v16, %v502_v20  ;;  %v536_v36 = vrot.slane %v529_v22, %v2384_v29 }
 0x1d3   : > { %v900_v35 = vrot.slane %v886_v26, %v2393_v33  ;;  %v905_v40 = vcombine.low %v877_v23, %v884_v25  ;;  %v1711_v41 = vcombine.high %v877_v23, %v884_v25  ;;  %v981_v23 = vld [vmem:[%s323_s14] sm:$0x1]  ;;  %v987_v26 = vsub.s32 0, %v2381_v27  ;;  %s2020_s14 = sshll.u32 %s2121_s18, 4  ;;  %s2021_s14 = int_to_ptr.vmem [resolvable:$false] %s2020_s14 }
 0x1d4   : > { %v520_v34 = vcombine.low %v511_v21, %v519_v24  ;;  %v544_v37 = vrot.slane %v537_v32, %v2384_v29  ;;  %v982_v24 = vsub.f32 1.0, %v981_v23  ;;  %p2023_p5 = scmp.lt.s32.totalorder %s2555_s11, %s2021_s14 }
 0x1d5   : > { %v921_v42 = vcombine.low %v893_v28, %v900_v35  ;;  %v1712_v45 = vcombine.high %v893_v28, %v900_v35  ;;  %v912_v49 = vrot.slane %v905_v40, %v2384_v29  ;;  %v920_v50 = vrot.slane %v1711_v41, %v2384_v29 }
 0x1d6   : > { %v527_v39 = vrot.slane %v520_v34, %v2393_v33  ;;  %v545_v44 = vcombine.low %v536_v36, %v544_v37  ;;  %v983_v25 = vmul.f32 -10000.0, %v982_v24 }
 0x1d7   : > { %v928_v51 = vrot.slane %v921_v42, %v2384_v29  ;;  %v936_v55 = vrot.slane %v1712_v45, %v2384_v29  ;;  %v937_v61 = vcombine.low %v912_v49, %v920_v50  ;;  %v938_v5 = vcombine.high %v912_v49, %v920_v50 }
 0x1d8   : > { %v528_v46 = vcombine.high %v527_v39, %v2116_v43  ;;  %v552_v47 = vrot.slane %v545_v44, %v2393_v33  ;;  %v558_v48 = vshrl.u32 %v527_v39, 16  ;;  %v988_v28 = vrot.slane %v983_v25, %v987_v26 }
 0x1d9   : > { %v953_v62 = vcombine.low %v928_v51, %v936_v55  ;;  %v945_v63 = vrot.slane %v937_v61, %v2393_v33  ;;  %v954_v6 = vcombine.high %v928_v51, %v936_v55  ;;  %v952_v12 = vrot.slane %v938_v5, %v2393_v33 }
 0x1da   : > { %v553_v52 = vcombine.high %v552_v47, %v2116_v43  ;;  %v556_v53 = vpack.i.b16 %v552_v47, %v527_v39  ;;  %v559_v54 = vshrl.u32 %v552_v47, 16  ;;  %v566_v58 = vshrl.u32 %v528_v46, 16 }
 0x1db   : > { %v961_v1 = vrot.slane %v953_v62, %v2393_v33  ;;  %v968_v13 = vrot.slane %v954_v6, %v2393_v33 }
 0x1dc   : > { %v560_v56 = vpack.i.b16 %v559_v54, %v558_v48  ;;  %v564_v57 = vpack.i.b16 %v553_v52, %v528_v46  ;;  %v567_v59 = vshrl.u32 %v553_v52, 16  ;;  %571 = vst.msk [vmem:[#allocation2] sm:$0xf] %vm570_vm2, %v556_v53 }
 0x1dd   : > { %v969_v8 = vcombine.low %v945_v63, %v961_v1  ;;  %v970_v9 = vcombine.high %v945_v63, %v961_v1  ;;  %v971_v19 = vcombine.low %v952_v12, %v968_v13  ;;  %v972_v20 = vcombine.high %v952_v12, %v968_v13 }
 0x1de   : > { %v568_v60 = vpack.i.b16 %v567_v59, %v566_v58  ;;  %572 = vst.msk [vmem:[#allocation2 + $0x4] sm:$0xf] %vm570_vm2, %v560_v56  ;;  %573 = vst.msk [vmem:[#allocation2 + $0x8] sm:$0xf] %vm570_vm2, %v564_v57 }
 0x1df   : > { %v973_v11 = vpack.c.bf16 %v969_v8, %v969_v8  ;;  %v974_v17 = vpack.c.bf16 %v970_v9, %v970_v9  ;;  %v975_v21 = vpack.c.bf16 %v971_v19, %v971_v19  ;;  %v976_v22 = vpack.c.bf16 %v972_v20, %v972_v20 }
 0x1e0   : > { %574 = vst.msk [vmem:[#allocation2 + $0xc] sm:$0xf] %vm570_vm2, %v568_v60 }
 0x1e3   : > { %v977_v2 = vld [vmem:[#allocation2] sm:$0xf] }
 0x1e4   : > { %v995_v3 = vsel %vm990_vm3, %v977_v2, 0 }
 0x1e5   : > { %1766 = vmatpush3.bf16.xpose.msra.mxu0 %v995_v3  ;;  %v978_v4 = vld [vmem:[#allocation2 + $0x4] sm:$0xf]  ;;  %v979_v10 = vld [vmem:[#allocation2 + $0x8] sm:$0xf] }
 0x1e6   : > { %v1041_v7 = vsel %vm990_vm3, %v978_v4, 0  ;;  %1777 = vmatprep.subr.bf16.mxu0 %v2109_v0  ;;  %v1087_v16 = vsel %vm990_vm3, %v979_v10, 0 }
 0x1e7   : > { %1772 = vmatpush3.bf16.xpose.msra.mxu1 %v1041_v7  ;;  %v980_v15 = vld [vmem:[#allocation2 + $0xc] sm:$0xf] }
 0x1e8   : > { %1783 = vmatprep.subr.bf16.mxu1 %v2109_v0  ;;  %v1133_v18 = vsel %vm990_vm3, %v980_v15, 0 }
 0x1ec   : > { %1768 = vmatmul.mubr.msk.bf16.vlgmr.msra.gmra.mrb[4].mxu0 %vm990_vm3, %v973_v11 }
 0x1ed   : > { %1778 = vmatpush3.bf16.xpose.msra.mxu0 %v1087_v16  ;;  %1779 = vmatprep.mubr.msk.bf16.mxu0 %vm2110_vm0, %v2109_v0 }
 0x1ee   : > { %1774 = vmatmul.mubr.msk.bf16.vlgmr.msra.gmra.mrb[4].mxu1 %vm990_vm3, %v974_v17  ;;  %1789 = vmatprep.subr.bf16.mxu0 %v2109_v0 }
 0x1ef   : > { %1784 = vmatpush3.bf16.xpose.msra.mxu1 %v1133_v18  ;;  %1785 = vmatprep.mubr.msk.bf16.mxu1 %vm2110_vm0, %v2109_v0 }
 0x1f0   : > { %1795 = vmatprep.subr.bf16.mxu1 %v2109_v0 }
 0x1f4   : > { %1780 = vmatmul.mubr.msk.bf16.vlgmr.msra.gmra.mrb[8].mxu0 %vm990_vm3, %v975_v21 }
 0x1f5   : > { %1791 = vmatprep.mubr.msk.bf16.mxu0 %vm2110_vm0, %v2109_v0 }
 0x1f6   : > { %1786 = vmatmul.mubr.msk.bf16.vlgmr.msra.gmra.mrb[8].mxu1 %vm990_vm3, %v976_v22 }
 0x1f7   : > { %1797 = vmatprep.mubr.msk.bf16.mxu1 %vm2110_vm0, %v2109_v0 }
 0x2bf   : > { %v1031_v32 = vpop.f32.mrb[4].mxu0 }
 0x2c0   : > { %v1032_v34 = vadd.f32 %v1031_v32, %v988_v28  ;;  %v1769_v35 = vpop.f32.mrb[5].mxu0 }
 0x2c1   : > { %v1034_v36 = vpop.f32.mrb[6].mxu0  ;;  %v1077_v37 = vpop.f32.mrb[4].mxu1 }
 0x2c2   : > { %v1078_v39 = vadd.f32 %v1077_v37, %v988_v28  ;;  %v1770_v40 = vpop.f32.mrb[7].mxu0  ;;  %v1775_v41 = vpop.f32.mrb[5].mxu1  ;;  %v1175_v42 = vsel %vm990_vm3, %v1032_v34, -inf }
 0x2c3   : > { %v1080_v44 = vpop.f32.mrb[6].mxu1  ;;  %1176 = vmax.xlane.f32.xlu0 %v1175_v42 }
 0x2c4   : > { %v1776_v45 = vpop.f32.mrb[7].mxu1  ;;  %v1178_v46 = vsel %vm990_vm3, %v1078_v39, -inf }
 0x2c5   : > { %1179 = vmax.xlane.f32.xlu1 %v1178_v46 }
 0x2c7   : > { %v1123_v47 = vpop.f32.mrb[8].mxu0 }
 0x2c8   : > { %v1124_v48 = vadd.f32 %v1123_v47, %v988_v28  ;;  %v1781_v27 = vpop.f32.mrb[9].mxu0 }
 0x2c9   : > { %v1126_v49 = vpop.f32.mrb[10].mxu0  ;;  %v1169_v50 = vpop.f32.mrb[8].mxu1 }
 0x2ca   : > { %v1170_v51 = vadd.f32 %v1169_v50, %v988_v28  ;;  %v1782_v52 = vpop.f32.mrb[11].mxu0  ;;  %v1787_v53 = vpop.f32.mrb[9].mxu1  ;;  %v1181_v54 = vsel %vm990_vm3, %v1124_v48, -inf }
 0x2cb   : > { %v1172_v55 = vpop.f32.mrb[10].mxu1  ;;  %1182 = vmax.xlane.f32.xlu0 %v1181_v54 }
 0x2cc   : > { %v1788_v56 = vpop.f32.mrb[11].mxu1  ;;  %v1184_v57 = vsel %vm990_vm3, %v1170_v51, -inf }
 0x2cf   : > { %1185 = vmax.xlane.f32.xlu0 %v1184_v57 }
 0x2d6   : > { %575 = vrot.lane.b32.xlu1 %v2376_v14, %s2117_s10 }
 0x2da   : > { %579 = vrot.lane.b32.xlu1 %v2397_v38, %s2117_s10 }
 0x2de   : > { %581 = vrot.lane.b32.xlu1 %v2386_v30, %s2117_s10 }
 0x2e5   : > { %577 = vrot.lane.b32.xlu0 %v2388_v31, %s2117_s10  ;;  %s2022_s10 = scalar_lea.vmem %s2021_s14, 256 }
 0x2e6   : > { %p2024_p9 = scmp.lt.s32.totalorder %s2022_s10, %s2016_s24 }
 0x2e8   : > { %p2025_p11 = por %p2024_p9, %p2023_p5 }
 0x2ea   : > { %p2026_p0 = pnand %p2025_p11, %p2019_p3 }
 0x350   : > { %v1177_v58 = vpop.xlane.xlu0 %1176 }
 0x351   : > { %v1187_v59 = vsub.f32 %v1032_v34, %v1177_v58 }
 0x352   : > { %v1180_v60 = vpop.xlane.xlu1 %1179 }
 0x353   : > { %v1191_v61 = vmul.f32 1.442695, %v1187_v59  ;;  %v1188_v62 = vsub.f32 %v1078_v39, %v1180_v60 }
 0x355   : > { %1914 = vpow2.f32 %v1191_v61  ;;  %v1193_v63 = vmul.f32 1.442695, %v1188_v62 }
 0x356   : > { %v576_v1 = vpop.permute.xlu1 %575 }
 0x357   : > { %1916 = vpow2.f32 %v1193_v63  ;;  %v590_v14 = vrot.slane %v576_v1, %v2384_v29 }
 0x358   : > { %v1183_v2 = vpop.xlane.xlu0 %1182 }
 0x359   : > { %v1189_v3 = vsub.f32 %v1124_v48, %v1183_v2 }
 0x35a   : > { %v580_v4 = vpop.permute.xlu1 %579 }
 0x35b   : > { %v1195_v5 = vmul.f32 1.442695, %v1189_v3  ;;  %v598_v38 = vrot.slane %v580_v4, %v2384_v29 }
 0x35c   : > { %v1186_v30 = vpop.xlane.xlu0 %1185 }
 0x35d   : > { %1918 = vpow2.f32 %v1195_v5  ;;  %v599_v31 = vcombine.low %v590_v14, %v598_v38  ;;  %v1190_v6 = vsub.f32 %v1170_v51, %v1186_v30  ;;  %v600_v8 = vcombine.high %v590_v14, %v598_v38 }
 0x35e   : > { %v582_v10 = vpop.permute.xlu1 %581 }
 0x35f   : > { %v2475_v7 = vpop.eup %1914  ;;  %v1197_v9 = vmul.f32 1.442695, %v1190_v6  ;;  %v607_v15 = vrot.slane %v599_v31, %v2393_v33  ;;  %v632_v16 = vrot.slane %v582_v10, %v2384_v29  ;;  %v614_v19 = vrot.slane %v600_v8, %v2393_v33 }
 0x360   : > { %v578_v11 = vpop.permute.xlu0 %577  ;;  %v1199_v12 = vsel %vm990_vm3, %v2475_v7, 0.0 }
 0x361   : > { %v2479_v13 = vpop.eup %1916  ;;  %1200 = vadd.xlane.f32.xlu0 %v1199_v12  ;;  %1920 = vpow2.f32 %v1197_v9  ;;  %v624_v17 = vrot.slane %v578_v11, %v2384_v29  ;;  %v615_v22 = vcombine.high %v607_v15, %v2116_v43  ;;  %v616_v26 = vcombine.high %v614_v19, %v2116_v43 }
 0x362   : > { %v1202_v18 = vsel %vm990_vm3, %v2479_v13, 0.0  ;;  %v655_v28 = vshrl.u32 %v607_v15, 16  ;;  %v671_v32 = vshrl.u32 %v614_v19, 16 }
 0x363   : > { %1203 = vadd.xlane.f32.xlu1 %v1202_v18  ;;  %v633_v20 = vcombine.low %v624_v17, %v632_v16  ;;  %v634_v21 = vcombine.high %v624_v17, %v632_v16  ;;  %v663_v39 = vshrl.u32 %v615_v22, 16  ;;  %v679_v48 = vshrl.u32 %v616_v26, 16 }
 0x365   : > { %v641_v23 = vrot.slane %v633_v20, %v2393_v33  ;;  %v648_v24 = vrot.slane %v634_v21, %v2393_v33 }
 0x367   : > { %v2490_v25 = vpop.eup %1918  ;;  %v649_v34 = vcombine.high %v641_v23, %v2116_v43  ;;  %v650_v35 = vcombine.high %v648_v24, %v2116_v43  ;;  %v653_v36 = vpack.i.b16 %v641_v23, %v607_v15  ;;  %v656_v37 = vshrl.u32 %v641_v23, 16 }
 0x368   : > { %v669_v40 = vpack.i.b16 %v648_v24, %v614_v19  ;;  %v672_v41 = vshrl.u32 %v648_v24, 16  ;;  %v1205_v42 = vsel %vm990_vm3, %v2490_v25, 0.0 }
 0x369   : > { %v657_v44 = vpack.i.b16 %v656_v37, %v655_v28  ;;  %v661_v45 = vpack.i.b16 %v649_v34, %v615_v22  ;;  %v664_v46 = vshrl.u32 %v649_v34, 16  ;;  %v677_v47 = vpack.i.b16 %v650_v35, %v616_v26  ;;  %1206 = vadd.xlane.f32.xlu0 %v1205_v42 }
 0x36a   : > { %v673_v27 = vpack.i.b16 %v672_v41, %v671_v32  ;;  %v680_v49 = vshrl.u32 %v650_v35, 16  ;;  %v683_v50 = vcombine.low %v653_v36, %v669_v40 }
 0x36b   : > { %v2497_v51 = vpop.eup %1920  ;;  %v665_v52 = vpack.i.b16 %v664_v46, %v663_v39  ;;  %v691_v53 = vcombine.low %v661_v45, %v677_v47 }
 0x36c   : > { %v681_v54 = vpack.i.b16 %v680_v49, %v679_v48  ;;  %v708_v55 = vcombine.low %v657_v44, %v673_v27  ;;  %v1208_v56 = vsel %vm990_vm3, %v2497_v51, 0.0  ;;  %v690_v57 = vrot.slane %v683_v50, %v2384_v29 }
 0x36d   : > { %v698_v58 = vrot.slane %v691_v53, %v2384_v29  ;;  %1209 = vadd.xlane.f32.xlu0 %v1208_v56 }
 0x36e   : > { %v716_v59 = vcombine.low %v665_v52, %v681_v54  ;;  %v715_v61 = vrot.slane %v708_v55, %v2384_v29 }
 0x36f   : > { %v699_v60 = vcombine.low %v690_v57, %v698_v58 }
 0x370   : > { %v723_v62 = vrot.slane %v716_v59, %v2384_v29 }
 0x371   : > { %v706_v63 = vrot.slane %v699_v60, %v2393_v33 }
 0x372   : > { %v724_v1 = vcombine.low %v715_v61, %v723_v62 }
 0x373   : > { %v707_v2 = vcombine.high %v706_v63, %v2116_v43  ;;  %v737_v5 = vshrl.u32 %v706_v63, 16 }
 0x374   : > { %v731_v3 = vrot.slane %v724_v1, %v2393_v33 }
 0x375   : > { %v745_v6 = vshrl.u32 %v707_v2, 16 }
 0x376   : > { %v732_v4 = vcombine.high %v731_v3, %v2116_v43  ;;  %v735_v14 = vpack.i.b16 %v731_v3, %v706_v63  ;;  %v738_v38 = vshrl.u32 %v731_v3, 16 }
 0x378   : > { %v739_v30 = vpack.i.b16 %v738_v38, %v737_v5  ;;  %v743_v31 = vpack.i.b16 %v732_v4, %v707_v2  ;;  %v746_v8 = vshrl.u32 %v732_v4, 16  ;;  %749 = vst.msk [vmem:[#allocation3] sm:$0xf] %vm570_vm2, %v735_v14 }
 0x37a   : > { %v747_v9 = vpack.i.b16 %v746_v8, %v745_v6  ;;  %750 = vst.msk [vmem:[#allocation3 + $0x4] sm:$0xf] %vm570_vm2, %v739_v30  ;;  %751 = vst.msk [vmem:[#allocation3 + $0x8] sm:$0xf] %vm570_vm2, %v743_v31 }
 0x37c   : > { %752 = vst.msk [vmem:[#allocation3 + $0xc] sm:$0xf] %vm570_vm2, %v747_v9 }
 0x37f   : > { %v1223_v10 = vld [vmem:[#allocation3] sm:$0xf] }
 0x380   : > { %v1232_v43 = vsel %vm1230_vm4, %v1223_v10, 0 }
 0x381   : > { %1790 = vmatpush3.bf16.msra.mxu0 %v1232_v43  ;;  %v1224_v11 = vld [vmem:[#allocation3 + $0x4] sm:$0xf]  ;;  %v1225_v22 = vld [vmem:[#allocation3 + $0x8] sm:$0xf] }
 0x382   : > { %v1278_v12 = vsel %vm1230_vm4, %v1224_v11, 0  ;;  %1801 = vmatprep.subr.bf16.mxu0 %v2109_v0  ;;  %v1324_v28 = vsel %vm1230_vm4, %v1225_v22, 0 }
 0x383   : > { %1796 = vmatpush3.bf16.msra.mxu1 %v1278_v12  ;;  %v1226_v26 = vld [vmem:[#allocation3 + $0xc] sm:$0xf] }
 0x384   : > { %1807 = vmatprep.subr.bf16.mxu1 %v2109_v0 }
 0x3ee   : > { %v1201_v15 = vpop.xlane.xlu0 %1200 }
 0x3ef   : > { %1922 = vrcp.f32 %v1201_v15 }
 0x3f0   : > { %v1204_v16 = vpop.xlane.xlu1 %1203 }
 0x3f1   : > { %1924 = vrcp.f32 %v1204_v16 }
 0x3f6   : > { %v1207_v17 = vpop.xlane.xlu0 %1206 }
 0x3f7   : > { %1926 = vrcp.f32 %v1207_v17 }
 0x3f9   : > { %v1923_v18 = vpop.eup %1922 }
 0x3fa   : > { %v1215_v19 = vmul.f32 %v1923_v18, %v2475_v7  ;;  %v1210_v21 = vpop.xlane.xlu0 %1209  ;;  %v1370_v7 = vsel %vm1230_vm4, %v1226_v26, 0 }
 0x3fb   : > { %v1925_v20 = vpop.eup %1924  ;;  %1928 = vrcp.f32 %v1210_v21 }
 0x3fc   : > { %v1216_v23 = vmul.f32 %v1925_v20, %v2479_v13  ;;  %v1219_v24 = vpack.c.bf16 %v1215_v19, %v1215_v19 }
 0x3fe   : > { %1792 = vmatmul.mubr.msk.bf16.vlgmr.msra.gmra.mrb[12].mxu0 %vm990_vm3, %v1219_v24  ;;  %v1220_v32 = vpack.c.bf16 %v1216_v23, %v1216_v23 }
 0x3ff   : > { %1802 = vmatpush3.bf16.msra.mxu0 %v1324_v28  ;;  %1803 = vmatprep.mubr.msk.bf16.mxu0 %vm2110_vm0, %v2109_v0 }
 0x400   : > { %1798 = vmatmul.mubr.msk.bf16.vlgmr.msra.gmra.mrb[12].mxu1 %vm990_vm3, %v1220_v32 }
 0x401   : > { %1808 = vmatpush3.bf16.msra.mxu1 %v1370_v7  ;;  %1809 = vmatprep.mubr.msk.bf16.mxu1 %vm2110_vm0, %v2109_v0  ;;  %v1927_v13 = vpop.eup %1926 }
 0x402   : > { %v1217_v34 = vmul.f32 %v1927_v13, %v2490_v25 }
 0x404   : > { %v1221_v35 = vpack.c.bf16 %v1217_v34, %v1217_v34 }
 0x405   : > { %v1929_v36 = vpop.eup %1928 }
 0x406   : > { %v1218_v37 = vmul.f32 %v1929_v36, %v2497_v51  ;;  %1804 = vmatmul.mubr.msk.bf16.vlgmr.msra.gmra.mrb[16].mxu0 %vm990_vm3, %v1221_v35 }
 0x408   : > { %v1222_v39 = vpack.c.bf16 %v1218_v37, %v1218_v37 }
 0x40a   : > { %1810 = vmatmul.mubr.msk.bf16.vlgmr.msra.gmra.mrb[16].mxu1 %vm990_vm3, %v1222_v39 }
 0x4d1   : > { %v1268_v40 = vpop.f32.mrb[12].mxu0 }
 0x4d2   : > { %v1793_v41 = vpop.f32.mrb[13].mxu0 }
 0x4d3   : > { %v1271_v42 = vpop.f32.mrb[14].mxu0  ;;  %v1314_v44 = vpop.f32.mrb[12].mxu1 }
 0x4d4   : > { %v1794_v45 = vpop.f32.mrb[15].mxu0  ;;  %v1799_v46 = vpop.f32.mrb[13].mxu1 }
 0x4d5   : > { %v1317_v47 = vpop.f32.mrb[14].mxu1 }
 0x4d6   : > { %v1800_v0 = vpop.f32.mrb[15].mxu1 }
 0x4d9   : > { %v1360_v48 = vpop.f32.mrb[16].mxu0 }
 0x4da   : > { %v1412_v27 = vcombine.low %v1268_v40, %v1360_v48  ;;  %v1413_v25 = vcombine.high %v1268_v40, %v1360_v48  ;;  %v1805_v49 = vpop.f32.mrb[17].mxu0 }
 0x4db   : > { %v1363_v50 = vpop.f32.mrb[18].mxu0 }
 0x4dc   : > { %v1806_v52 = vpop.f32.mrb[19].mxu0  ;;  %v1420_v57 = vrot.slane %v1412_v27, %v2384_v29  ;;  %v1427_v58 = vrot.slane %v1413_v25, %v2384_v29 }
 0x4dd   : > { %v1406_v51 = vpop.f32.mrb[16].mxu1 }
 0x4de   : > { %v1428_v53 = vcombine.low %v1314_v44, %v1406_v51  ;;  %v1429_v54 = vcombine.high %v1314_v44, %v1406_v51  ;;  %v1811_v55 = vpop.f32.mrb[17].mxu1 }
 0x4df   : > { %v1409_v56 = vpop.f32.mrb[18].mxu1 }
 0x4e0   : > { %v1436_v59 = vrot.slane %v1428_v53, %v2384_v29  ;;  %v1443_v60 = vrot.slane %v1429_v54, %v2384_v29  ;;  %v1812_v61 = vpop.f32.mrb[19].mxu1 }
 0x4e2   : > { %v1444_v62 = vcombine.low %v1420_v57, %v1436_v59  ;;  %v1445_v63 = vcombine.high %v1420_v57, %v1436_v59  ;;  %v1460_v1 = vcombine.low %v1427_v58, %v1443_v60  ;;  %v1461_v2 = vcombine.high %v1427_v58, %v1443_v60 }
 0x4e4   : > { %v1452_v3 = vrot.slane %v1444_v62, %v2393_v33  ;;  %v1459_v4 = vrot.slane %v1445_v63, %v2393_v33  ;;  %v1468_v14 = vrot.slane %v1460_v1, %v2393_v33  ;;  %v1475_v5 = vrot.slane %v1461_v2, %v2393_v33 }
 0x4e6   : > { %v1480_v38 = vcombine.low %v1452_v3, %v1459_v4  ;;  %v1721_v30 = vcombine.high %v1452_v3, %v1459_v4  ;;  %v1496_v31 = vcombine.low %v1468_v14, %v1475_v5  ;;  %v1722_v6 = vcombine.high %v1468_v14, %v1475_v5 }
 0x4e8   : > { %v1487_v8 = vrot.slane %v1480_v38, %v2384_v29  ;;  %v1495_v9 = vrot.slane %v1721_v30, %v2384_v29  ;;  %v1503_v10 = vrot.slane %v1496_v31, %v2384_v29  ;;  %v1511_v43 = vrot.slane %v1722_v6, %v2384_v29 }
 0x4ea   : > { %v1513_v11 = vcombine.high %v1487_v8, %v1495_v9  ;;  %v1529_v12 = vcombine.high %v1503_v10, %v1511_v43  ;;  %v1512_v15 = vcombine.low %v1487_v8, %v1495_v9  ;;  %v1528_v16 = vcombine.low %v1503_v10, %v1511_v43 }
 0x4ec   : > { %v1527_v17 = vrot.slane %v1513_v11, %v2393_v33  ;;  %v1543_v18 = vrot.slane %v1529_v12, %v2393_v33  ;;  %v1520_v19 = vrot.slane %v1512_v15, %v2393_v33  ;;  %v1536_v20 = vrot.slane %v1528_v16, %v2393_v33 }
 0x4ee   : > { %v1546_v21 = vcombine.low %v1527_v17, %v1543_v18  ;;  %v1545_v22 = vcombine.high %v1520_v19, %v1536_v20  ;;  %v1547_v23 = vcombine.high %v1527_v17, %v1543_v18  ;;  %v1544_v24 = vcombine.low %v1520_v19, %v1536_v20 }
 0x4f0   : > { %1553 = vrot.lane.b32.xlu0 %v1546_v21, %s2118_s20  ;;  %1549 = vrot.lane.b32.xlu1 %v1545_v22, %s2119_s27 }
 0x4f4   : > { %1557 = vrot.lane.b32.xlu1 %v1547_v23, %s2120_s29 }
 0x562   : > { %v1550_v29 = vpop.permute.xlu1 %1549  ;;  %v1554_v26 = vpop.permute.xlu0 %1553 }
 0x563   : > { %v1560_v28 = vsel %vm990_vm3, %v1544_v24, %v1550_v29 }
 0x564   : > { %v1562_v32 = vsel %vm1561_vm5, %v1560_v28, %v1554_v26 }
 0x566   : > { %v1558_v33 = vpop.permute.xlu1 %1557 }
 0x567   : > { %v1564_v7 = vsel %vm1563_vm6, %v1562_v32, %v1558_v33 }
 0x568   : > { %1565 = vst.msk [vmem:[%s320_s28] sm:$0xff] %vm353_vm1, %v1564_v7 }
 0x569   : > { %2029 = shalt.err (!%p2026_p0)
}
 0x56a   : > { %s2030_s17 = scalar_lea.hbm %s2553_s19, 128  ;;  %s2034_s29 = scalar_lea.hbm %s2609_s6, 256 }
 0x56b   : > { %p2031_p4 = scmp.ne.s32.totalorder %s2553_s19, %s2030_s17  ;;  %p2035_p7 = scmp.lt.u32.totalorder %s2553_s19, %s2609_s6 }
 0x56c   : > { %p2036_p12 = scmp.lt.u32.totalorder %s2034_s29, %s2030_s17  ;;  %p2038_p2 = scmp.lt.u32.totalorder %s2030_s17, %s2553_s19 }
 0x56d   : > { %p2032_p13 = pnand %p2031_p4, %p2626_p1 }
 0x56e   : > { %p2037_p8 = por %p2036_p12, %p2035_p7 }
 0x56f   : > { %p2033_p6 = pneg %p2032_p13 }
 0x570   : > { %p2039_p10 = por %p2038_p2, %p2037_p8 }
 0x572   : > { %p2040_p3 = pnand %p2039_p10, %p2033_p6 }
 0x574   : > { %2043 = shalt.err (!%p2040_p3)
}
 0x575   : > { %1823 = dma.vmem_to_hbm [thread:$0]  (%p2626_p1), %s2555_s11, 128, %s2553_s19, %s1567_s30  }
 0x576 PF: > { %s2627_s28 = sld [smem:[#allocation14_spill]]  ;;  %s1593_s8 = sand.u32 1, %s2082_s21  }
 0x577   : > { %p2629_p9 = scmp.ge.s32.totalorder %s2102_s26, 2  ;;  %s1594_s15 = scalar_lea.sflag [#allocation6], %s1593_s8 }
 0x57c   : > { %p2628_p5 = scmp.ne.s32.totalorder %s2627_s28, 0 }
 0x57e   : > { %p1837_p11 = pnand %p2629_p9, %p2628_p5 }
 0x580   : > { %2077 = dma.done.wait (!%p1837_p11), %s1594_s15, 128  }
 0x581   : > { %2079 = vsyncadd (!%p1837_p11), %s1594_s15, 4294967168  ;;  %s23_s26 = sadd.s32 1, %s2102_s26   ;;  %s2630_s21 = smov %s2086_s22 }
 0x582   : > { %p20_p0 = scmp.ge.s32.totalorder %s23_s26, 4   ;;  %s2631_s22 = smov %s2090_s23 }
 0x583   : > { %s2632_s23 = smov %s2299_s13  ;;  %s2633_s24 = smov %s2098_s25 }
 0x584   : > { %s2634_s25 = smov %s2636_s16  ;;  %22 = sbr.rel (!%p20_p0) target bundleno = 7 (0x7), region = 105 }
 0x58b   :  { %1599 = vsyncpa [#allocation5], 1 }
 0x58c   :  { %1601 = vsyncpa [#allocation5 + $0x1], 1 }
 0x58d   :  { %1602 = vsyncpa [#allocation8], 1 }
 0x58e   :  { %1603 = vsyncpa [#allocation6], 1 }
 0x58f   :  { %1605 = vsyncpa [#allocation6 + $0x1], 1 }

</bundles_post_ra>
